<compile_context>
chip_gen: v6e
topology: v6e:2x2x1
jax: 0.10.0
libtpu: 0.0.40
codegen_flags: <defaults>
</compile_context>

<pallas_src>
import jax
import jax.numpy as jnp
from jax.experimental import pallas as pl
from jax.experimental.pallas import tpu as pltpu

_LANES = 1024            # last-dim width: wide multiple of 128 -> unmasked vst
_TILE_ROWS = 512         # rows per block: 512x1024 f32 = 2 MiB per buffer
_MIN_PALLAS_ELEMS = 1 << 16  # below this, XLA's fused elementwise add wins


def _axpy_kernel(gamma_ref, a_ref, b_ref, o_ref):
    # out = x_ccd + gamma * x_dem  (elementwise, VPU)
    gamma = gamma_ref[0]  # f32 scalar from SMEM
    o_ref[...] = (a_ref[...] + gamma * b_ref[...]).astype(o_ref.dtype)


def cat_no_attention_forward(x_ccd, x_dem, gamma, *, use_pallas=None):
    """Pallas implementation of Cat_noAttention.forward((x_ccd, x_dem)).

    x_ccd, x_dem: NCHW arrays of identical shape/dtype.
    gamma: scalar parameter (shape (1,) or scalar), matches the nn.Parameter.
    """
    assert x_ccd.shape == x_dem.shape and x_ccd.dtype == x_dem.dtype
    orig_shape = x_ccd.shape
    dtype = x_ccd.dtype
    total = x_ccd.size
    gamma = jnp.asarray(gamma, jnp.float32).reshape(1)

    if use_pallas is None:
        use_pallas = total >= _MIN_PALLAS_ELEMS
    if not use_pallas:
        # Tiny tensors: kernel-launch overhead dwarfs the data movement.
        return (x_ccd + gamma[0] * x_dem).astype(dtype)

    # --- lane-dense flattening -------------------------------------------
    a = x_ccd.reshape(-1)
    b = x_dem.reshape(-1)
    padded_total = -(-total // _LANES) * _LANES
    if padded_total != total:
        pad = padded_total - total
        a = jnp.pad(a, (0, pad))
        b = jnp.pad(b, (0, pad))
    rows = padded_total // _LANES
    a2 = a.reshape(rows, _LANES)
    b2 = b.reshape(rows, _LANES)

    # --- row tiling --------------------------------------------------------
    # If rows < _TILE_ROWS we use the full row extent (always legal); otherwise
    # 512-row blocks (divisible by 8) and let Pallas mask the ragged last block.
    tile_r = rows if rows <= _TILE_ROWS else _TILE_ROWS
    grid = (pl.cdiv(rows, tile_r),)

    itemsize = jnp.dtype(dtype).itemsize
    cost = pl.CostEstimate(
        flops=2 * total,                    # one mul + one add per element
        transcendentals=0,
        bytes_accessed=3 * total * itemsize,
    )

    out2 = pl.pallas_call(
        _axpy_kernel,
        out_shape=jax.ShapeDtypeStruct((rows, _LANES), dtype),
        grid_spec=pltpu.PrefetchScalarGridSpec(
            num_scalar_prefetch=0,
            grid=grid,
            in_specs=[
                pl.BlockSpec(memory_space=pltpu.MemorySpace.SMEM),   # gamma
                pl.BlockSpec((tile_r, _LANES), lambda i: (i, 0)),    # x_ccd
                pl.BlockSpec((tile_r, _LANES), lambda i: (i, 0)),    # x_dem
            ],
            out_specs=pl.BlockSpec((tile_r, _LANES), lambda i: (i, 0)),
        ),
        compiler_params=pltpu.CompilerParams(
            dimension_semantics=("parallel",),
            vmem_limit_bytes=32 * 1024 * 1024,
        ),
        cost_estimate=cost,
    )(gamma, a2, b2)

    out = out2.reshape(-1)
    if padded_total != total:
        out = out[:total]
    return out.reshape(orig_shape)


if __name__ == "__main__":
    key = jax.random.PRNGKey(0)
    k1, k2 = jax.random.split(key)

    # Small shapes consistent with the module: batch=2, channels=4, spatial=16.
    shape = (2, 4, 16, 16)
    x_ccd = jax.random.normal(k1, shape, dtype=jnp.float32)
    x_dem = jax.random.normal(k2, shape, dtype=jnp.float32)

    # Deterministic init matching nn.Parameter(torch.zeros(1)).
    gamma = jnp.zeros((1,), dtype=jnp.float32)

    # Force the Pallas path so the kernel itself is exercised on TPU.
    out = cat_no_attention_forward(x_ccd, x_dem, gamma, use_pallas=True)
    out = jax.block_until_ready(out)
    ref = gamma[0] * x_dem + x_ccd
    assert out.shape == shape
    assert jnp.allclose(out, ref, rtol=1e-6, atol=1e-6)

    # Also exercise a nonzero gamma to validate the multiply path.
    gamma_nz = jnp.full((1,), 0.5, dtype=jnp.float32)
    out_nz = jax.block_until_ready(
        cat_no_attention_forward(x_ccd, x_dem, gamma_nz, use_pallas=True)
    )
    ref_nz = gamma_nz[0] * x_dem + x_ccd
    assert jnp.allclose(out_nz, ref_nz, rtol=1e-6, atol=1e-6)

    print("KERNEL_OK")
</pallas_src>

<mosaic_0001>
module attributes {stable_mosaic.version = 11 : i64} {
  func.func @_axpy_kernel(%arg0: i32, %arg1: memref<1xf32, #tpu.memory_space<smem>>, %arg2: memref<2x1024xf32, #tpu.memory_space<vmem>>, %arg3: memref<2x1024xf32, #tpu.memory_space<vmem>>, %arg4: memref<2x1024xf32, #tpu.memory_space<vmem>>) attributes {dimension_semantics = [#tpu.dimension_semantics<parallel>], iteration_bounds = array<i64: 1>, scalar_prefetch = 0 : i64, scratch_operands = 0 : i64, tpu.core_type = #tpu.core_type<tc>, window_params = [{transform_indices = @transform_0, window_bounds = array<i64: 1>}, {transform_indices = @transform_1, window_bounds = array<i64: 2, 1024>}, {transform_indices = @transform_2, window_bounds = array<i64: 2, 1024>}, {transform_indices = @transform_3, window_bounds = array<i64: 2, 1024>}]} {
    %c0 = arith.constant 0 : index
    %0 = memref.load %arg1[%c0] : memref<1xf32, #tpu.memory_space<smem>>
    %c0_0 = arith.constant 0 : index
    %c0_1 = arith.constant 0 : index
    %1 = vector.load %arg2[%c0_0, %c0_1] : memref<2x1024xf32, #tpu.memory_space<vmem>>, vector<2x1024xf32>
    %c0_2 = arith.constant 0 : index
    %c0_3 = arith.constant 0 : index
    %2 = vector.load %arg3[%c0_2, %c0_3] : memref<2x1024xf32, #tpu.memory_space<vmem>>, vector<2x1024xf32>
    %3 = vector.broadcast %0 : f32 to vector<2x1024xf32>
    %4 = arith.mulf %3, %2 : vector<2x1024xf32>
    %5 = arith.addf %1, %4 : vector<2x1024xf32>
    %c0_4 = arith.constant 0 : index
    %c0_5 = arith.constant 0 : index
    %6 = vector.load %arg4[%c0_4, %c0_5] : memref<2x1024xf32, #tpu.memory_space<vmem>>, vector<2x1024xf32>
    tpu.vector_store %arg4[%c0_4, %c0_5], %5 {strides = array<i32>} : memref<2x1024xf32, #tpu.memory_space<vmem>>, vector<2x1024xf32>,
    return
  }
  func.func @transform_0(%arg0: i32) -> i32 {
    %c0_i32 = arith.constant 0 : i32
    %c0_i32_0 = arith.constant 0 : i32
    return %c0_i32 : i32
  }
  func.func @transform_1(%arg0: i32) -> (i32, i32) {
    %c0_i32 = arith.constant 0 : i32
    %c0_i32_0 = arith.constant 0 : i32
    return %arg0, %c0_i32 : i32, i32
  }
  func.func @transform_2(%arg0: i32) -> (i32, i32) {
    %c0_i32 = arith.constant 0 : i32
    %c0_i32_0 = arith.constant 0 : i32
    return %arg0, %c0_i32 : i32, i32
  }
  func.func @transform_3(%arg0: i32) -> (i32, i32) {
    %c0_i32 = arith.constant 0 : i32
    %c0_i32_0 = arith.constant 0 : i32
    return %arg0, %c0_i32 : i32, i32
  }
}

</mosaic_0001>

<bundles_post_ra>
// kernel: tpu_custom_call.1
= control target key start
LH: loop header
LB: loop body
LE: loop exit
PB: predicated region body
PF: predicated region fallthrough
CT: control target
= control target key end

     0   :  { %9 = vsyncpa [#allocation4], 0  ;;  %s172_s0 = inlined_call_operand.<no memory space> [shape: f32[1], index: 0, kind: input, shape index: {}]   ;;  %s173_s1 = inlined_call_operand.hbm [shape: f32[2,1024], index: 1, kind: input, shape index: {}]   ;;  %s174_s2 = inlined_call_operand.hbm [shape: f32[2,1024], index: 2, kind: input, shape index: {}]   ;;  %s175_s3 = inlined_call_operand.hbm [shape: f32[2,1024], index: 3, kind: output, shape index: {}]  }
   0x1   :  { %10 = vsyncpa [#allocation7], 0 }
   0x2   :  { %11 = vsyncpa [#allocation5], 0  ;;  %s137_s12 = smov [#allocation3]   ;;  %s138_s14 = smov [#allocation6]  }
   0x3   :  { %s20_s13 = sshll.u32 %s137_s12, 4  ;;  %s30_s15 = sshll.u32 %s138_s14, 4  ;;  %s21_s13 = int_to_ptr.vmem [resolvable:$true] %s20_s13  ;;  %s31_s15 = int_to_ptr.vmem [resolvable:$true] %s30_s15 }
   0x4   :  { %s79_s16 = scalar_lea.vmem %s21_s13, 256  ;;  %p84_p1 = scmp.lt.s32.totalorder %s21_s13, %s21_s13 }
   0x5   :  { %p80_p0 = scmp.ne.s32.totalorder %s21_s13, %s79_s16  ;;  %p85_p2 = scmp.lt.s32.totalorder %s79_s16, %s79_s16 }
   0x7   :  { %p86_p3 = por %p85_p2, %p84_p1 }
   0x9   :  { %p87_p4 = pnand %p86_p3, %p80_p0 }
   0xb   :  { %90 = shalt.err (!%p87_p4)
}
   0xc   :  { %23 = dma.hbm_to_vmem [thread:$0]  %s173_s1, 256, %s21_s13, [#allocation4]  }
   0xd   :  { %s99_s19 = scalar_lea.vmem %s31_s15, 256  ;;  %p104_p6 = scmp.lt.s32.totalorder %s31_s15, %s31_s15 }
   0xe   :  { %p100_p5 = scmp.ne.s32.totalorder %s31_s15, %s99_s19  ;;  %p105_p7 = scmp.lt.s32.totalorder %s99_s19, %s99_s19 }
  0x10   :  { %p106_p8 = por %p105_p7, %p104_p6 }
  0x12   :  { %p107_p9 = pnand %p106_p8, %p100_p5 }
  0x14   :  { %110 = shalt.err (!%p107_p9)
}
  0x15   :  { %33 = dma.hbm_to_vmem [thread:$0]  %s174_s2, 256, %s31_s15, [#allocation7]  }
  0x16   :  { %131 = dma.done.wait [#allocation4], 256  }
  0x17   :  { %132 = vsyncadd [#allocation4], 4294967040 }
  0x18   :  { %133 = dma.done.wait [#allocation7], 256  }
  0x19   :  { %134 = vsyncadd [#allocation7], 4294967040  ;;  %v45_v0 = vstv %s172_s0  ;;  %v41_v1 = vld [vmem:[#allocation3] sm:$0xff]  ;;  %v43_v2 = vld [vmem:[#allocation6] sm:$0xff]  ;;  %s139_s1 = smov [#allocation8]  }
  0x1a   :  { %v46_v3 = vmul.f32 %v45_v0, %v43_v2  ;;  %v42_v4 = vld [vmem:[#allocation3 + $0x8] sm:$0xff]  ;;  %v44_v5 = vld [vmem:[#allocation6 + $0x8] sm:$0xff]  ;;  %s58_s24 = sshll.u32 %s139_s1, 4  ;;  %s59_s24 = int_to_ptr.vmem [resolvable:$true] %s58_s24 }
  0x1b   :  { %v47_v6 = vmul.f32 %v45_v0, %v44_v5  ;;  %s111_s2 = scalar_lea.vmem %s59_s24, 256  ;;  %p116_p11 = scmp.lt.s32.totalorder %s59_s24, %s59_s24 }
  0x1c   :  { %v48_v7 = vadd.f32 %v46_v3, %v41_v1  ;;  %p112_p10 = scmp.ne.s32.totalorder %s59_s24, %s111_s2  ;;  %p117_p12 = scmp.lt.s32.totalorder %s111_s2, %s111_s2 }
  0x1d   :  { %v49_v8 = vadd.f32 %v47_v6, %v42_v4 }
  0x1e   :  { %50 = vst [vmem:[#allocation8] sm:$0xff] %v48_v7  ;;  %p118_p13 = por %p117_p12, %p116_p11 }
  0x1f   :  { %51 = vst [vmem:[#allocation8 + $0x8] sm:$0xff] %v49_v8 }
  0x20   :  { %p119_p0 = pnand %p118_p13, %p112_p10 }
  0x22   :  { %122 = shalt.err (!%p119_p0)
}
  0x23   :  { %61 = dma.vmem_to_hbm [thread:$0]  %s59_s24, 256, %s175_s3, [#allocation5]  }
  0x24   :  { %135 = dma.done.wait [#allocation5], 256  }
  0x25   :  { %136 = vsyncadd [#allocation5], 4294967040 }
  0x26   :  { %65 = vsyncpa [#allocation4], 1 }
  0x27   :  { %66 = vsyncpa [#allocation7], 1 }
  0x28   :  { %67 = vsyncpa [#allocation5], 1 }

</bundles_post_ra>
